<compile_context>
chip_gen: v6e
topology: v6e:2x2x1
jax: 0.10.0
libtpu: 0.0.40
codegen_flags: <defaults>
</compile_context>

<pallas_src>
import functools

import jax
import jax.numpy as jnp
from jax.experimental import pallas as pl
from jax.experimental.pallas import tpu as pltpu


def _round_up(x, m):
    return ((x + m - 1) // m) * m


def _flame_kernel(params_ref, basis_ref, verts_ref):
    # verts[:, n0:n0+tn] = params @ basis_tile   (template folded in as a bias
    # row of the basis, selected by the constant-1 params column).
    verts_ref[...] = jnp.dot(params_ref[...], basis_ref[...],
                             preferred_element_type=jnp.float32)


def precompute_flame_bases(v_template, shapedirs, expressiondirs, j_regressor,
                           basis_dtype=jnp.bfloat16):
    """One-time init-side glue: flatten / fuse / pad the FLAME bases.

    Returns:
      basis  [P_pad, V3_pad]  fused (shape + expression + template-bias-row)
                              blendshape basis, lane-dense, padded to
                              (multiple-of-16, multiple-of-128), cast to
                              `basis_dtype` (bf16 by default).
      jbasis [P_pad, J*3]     joint-space basis (J_regressor folded into param
                              space, template bias row included), kept f32 —
                              tiny, consumed by a plain jnp.dot in the wrapper.
    """
    V = v_template.shape[0]
    S = shapedirs.shape[-1]
    E = expressiondirs.shape[-1]
    J = j_regressor.shape[0]
    V3 = V * 3

    sd = jnp.transpose(shapedirs, (2, 0, 1)).reshape(S, V3)
    ed = jnp.transpose(expressiondirs, (2, 0, 1)).reshape(E, V3)
    vt = v_template.reshape(1, V3)
    fused = jnp.concatenate([sd, ed, vt], axis=0).astype(jnp.float32)  # [P, V3]

    P = S + E + 1                      # + template bias row
    P_pad = _round_up(P, 16)           # sublane multiple for f32 (8) and bf16 (16)
    V3_pad = _round_up(V3, 128)        # lane multiple (unmasked stores)

    basis = jnp.zeros((P_pad, V3_pad), jnp.float32).at[:P, :V3].set(fused)

    # joints[b] = Jreg @ verts[b]  ==  params[b] @ jbasis   in param space.
    jbasis = jnp.einsum('jv,pvc->pjc', j_regressor.astype(jnp.float32),
                        fused.reshape(P, V, 3)).reshape(P, J * 3)
    jbasis_pad = jnp.zeros((P_pad, J * 3), jnp.float32).at[:P, :].set(jbasis)

    return basis.astype(basis_dtype), jbasis_pad


def flame_forward(shape_params, exp_params, pose_params, basis, jbasis,
                  *, num_verts, tile_n=4096):
    """Pallas implementation of FlameModel.forward.

    shape_params [B, n_shape], exp_params [B, n_exp], pose_params [B, 6]
    (pose accepted for signature parity; as in the reference forward it does
    not affect vertices/joints).  `basis`/`jbasis` come from
    `precompute_flame_bases`.  Returns (vertices [B, V, 3], joints [B, J, 3]).
    """
    del pose_params
    B = shape_params.shape[0]
    S = shape_params.shape[1]
    E = exp_params.shape[1]
    P = S + E + 1
    P_pad, V3_pad = basis.shape
    J3 = jbasis.shape[1]

    # Params with the constant-1 bias column + zero padding up to P_pad.
    params_f32 = jnp.concatenate(
        [shape_params.astype(jnp.float32),
         exp_params.astype(jnp.float32),
         jnp.ones((B, 1), jnp.float32),
         jnp.zeros((B, P_pad - P), jnp.float32)], axis=1)            # [B, P_pad]
    params = params_f32.astype(basis.dtype)

    # Lane-dense tiling of the (padded) V*3 axis; multiple of 128 or full axis.
    if tile_n >= V3_pad:
        tn = V3_pad
    else:
        tn = max((tile_n // 128) * 128, 128)
    grid = (pl.cdiv(V3_pad, tn),)

    item = basis.dtype.itemsize
    cost = pl.CostEstimate(
        flops=2 * B * P_pad * V3_pad,
        transcendentals=0,
        bytes_accessed=P_pad * V3_pad * item                 # basis stream (dominant)
                       + B * P_pad * item                    # params
                       + B * V3_pad * 4)                     # f32 output

    verts_flat = pl.pallas_call(
        _flame_kernel,
        out_shape=jax.ShapeDtypeStruct((B, V3_pad), jnp.float32),
        grid_spec=pltpu.PrefetchScalarGridSpec(
            num_scalar_prefetch=0,
            grid=grid,
            in_specs=[
                pl.BlockSpec((B, P_pad), lambda i: (0, 0)),   # params (resident)
                pl.BlockSpec((P_pad, tn), lambda i: (0, i)),  # fused basis tile
            ],
            out_specs=pl.BlockSpec((B, tn), lambda i: (0, i)),
        ),
        compiler_params=pltpu.CompilerParams(
            # No grid-invariant output left -> the axis can be sharded across
            # TensorCores (dual-TC on v7x).
            dimension_semantics=("parallel",),
        ),
        cost_estimate=cost,
    )(params, basis)

    # Joints: tiny [B, P_pad] x [P_pad, J*3] dot, kept f32 and done in XLA.
    joints_flat = jnp.dot(params_f32, jbasis, preferred_element_type=jnp.float32)

    V3 = num_verts * 3
    vertices = verts_flat[:, :V3].reshape(B, num_verts, 3)
    joints = joints_flat.reshape(B, J3 // 3, 3)
    return vertices, joints


if __name__ == "__main__":
    # Small, deterministic synthetic "FLAME" model (no file loading).
    B, V, S, E, J = 2, 256, 32, 16, 15
    key = jax.random.PRNGKey(0)
    ks = jax.random.split(key, 7)
    v_template = jax.random.normal(ks[0], (V, 3), jnp.float32) * 0.1
    shapedirs = jax.random.normal(ks[1], (V, 3, S), jnp.float32) * 0.01
    expressiondirs = jax.random.normal(ks[2], (V, 3, E), jnp.float32) * 0.01
    j_regressor = jax.random.normal(ks[3], (J, V), jnp.float32) * (1.0 / V)

    shape_params = jax.random.normal(ks[4], (B, S), jnp.float32)
    exp_params = jax.random.normal(ks[5], (B, E), jnp.float32)
    pose_params = jax.random.normal(ks[6], (B, 6), jnp.float32)

    # Pure-JAX reference (intended FLAME math).
    ref_v = (v_template[None]
             + jnp.einsum('bs,vcs->bvc', shape_params, shapedirs)
             + jnp.einsum('be,vce->bvc', exp_params, expressiondirs))
    ref_j = jnp.einsum('jv,bvc->bjc', j_regressor, ref_v)

    # tile_n=256 exercises the tiled (multi-grid-step) path at these small
    # sizes; real FLAME (V*3 ~ 15069 -> padded 15104) uses the default 4096.
    # --- f32 basis path (exact) ---
    basis32, jbasis32 = precompute_flame_bases(
        v_template, shapedirs, expressiondirs, j_regressor,
        basis_dtype=jnp.float32)
    fwd32 = jax.jit(functools.partial(flame_forward, num_verts=V, tile_n=256))
    v32, j32 = fwd32(shape_params, exp_params, pose_params, basis32, jbasis32)
    jax.block_until_ready((v32, j32))

    assert v32.shape == (B, V, 3) and v32.dtype == jnp.float32
    assert j32.shape == (B, J, 3) and j32.dtype == jnp.float32
    assert jnp.allclose(v32, ref_v, atol=1e-4, rtol=1e-4)
    assert jnp.allclose(j32, ref_j, atol=1e-4, rtol=1e-4)

    # --- bf16 basis path (default; halves HBM traffic, f32 accumulate) ---
    basis16, jbasis16 = precompute_flame_bases(
        v_template, shapedirs, expressiondirs, j_regressor)  # bf16 default
    fwd16 = jax.jit(functools.partial(flame_forward, num_verts=V, tile_n=256))
    v16, j16 = fwd16(shape_params, exp_params, pose_params, basis16, jbasis16)
    jax.block_until_ready((v16, j16))

    assert v16.shape == (B, V, 3) and v16.dtype == jnp.float32
    assert j16.shape == (B, J, 3) and j16.dtype == jnp.float32
    assert jnp.allclose(v16, ref_v, atol=5e-3, rtol=0)   # bf16 basis quantization
    assert jnp.allclose(j16, ref_j, atol=1e-4, rtol=1e-4)  # joints path stays f32

    print("KERNEL_OK")
</pallas_src>

<mosaic_0001>
module attributes {stable_mosaic.version = 11 : i64} {
  func.func @_flame_kernel(%arg0: i32, %arg1: memref<2x64xf32, #tpu.memory_space<vmem>>, %arg2: memref<64x256xf32, #tpu.memory_space<vmem>>, %arg3: memref<2x256xf32, #tpu.memory_space<vmem>>) attributes {dimension_semantics = [#tpu.dimension_semantics<parallel>], iteration_bounds = array<i64: 3>, scalar_prefetch = 0 : i64, scratch_operands = 0 : i64, tpu.core_type = #tpu.core_type<tc>, window_params = [{pipeline_mode = #tpu.pipeline_mode<synchronous>, transform_indices = @transform_0, window_bounds = array<i64: 2, 64>}, {transform_indices = @transform_1, window_bounds = array<i64: 64, 256>}, {transform_indices = @transform_2, window_bounds = array<i64: 2, 256>}]} {
    %c0 = arith.constant 0 : index
    %c0_0 = arith.constant 0 : index
    %0 = vector.load %arg1[%c0, %c0_0] : memref<2x64xf32, #tpu.memory_space<vmem>>, vector<2x64xf32>
    %c0_1 = arith.constant 0 : index
    %c0_2 = arith.constant 0 : index
    %1 = vector.load %arg2[%c0_1, %c0_2] : memref<64x256xf32, #tpu.memory_space<vmem>>, vector<64x256xf32>
    %cst = arith.constant dense<0.000000e+00> : vector<2x256xf32>
    %2 = tpu.matmul %0, %1, %cst {dimension_numbers = #tpu.dot_dimension_numbers<[1], [0], [0], [1], [0, 0, 1, 1], [], []>} : vector<2x64xf32>, vector<64x256xf32>, vector<2x256xf32> -> vector<2x256xf32>
    %c0_3 = arith.constant 0 : index
    %c0_4 = arith.constant 0 : index
    %3 = vector.load %arg3[%c0_3, %c0_4] : memref<2x256xf32, #tpu.memory_space<vmem>>, vector<2x256xf32>
    tpu.vector_store %arg3[%c0_3, %c0_4], %2 {strides = array<i32>} : memref<2x256xf32, #tpu.memory_space<vmem>>, vector<2x256xf32>,
    return
  }
  func.func @transform_0(%arg0: i32) -> (i32, i32) {
    %c0_i32 = arith.constant 0 : i32
    %c0_i32_0 = arith.constant 0 : i32
    %c0_i32_1 = arith.constant 0 : i32
    return %c0_i32, %c0_i32_0 : i32, i32
  }
  func.func @transform_1(%arg0: i32) -> (i32, i32) {
    %c0_i32 = arith.constant 0 : i32
    %c0_i32_0 = arith.constant 0 : i32
    return %c0_i32, %arg0 : i32, i32
  }
  func.func @transform_2(%arg0: i32) -> (i32, i32) {
    %c0_i32 = arith.constant 0 : i32
    %c0_i32_0 = arith.constant 0 : i32
    return %c0_i32, %arg0 : i32, i32
  }
}

</mosaic_0001>

<bundles_post_ra>
// kernel: flame_forward.1
= control target key start
LH: loop header
LB: loop body
LE: loop exit
PB: predicated region body
PF: predicated region fallthrough
CT: control target
= control target key end

     0   :  { %7 = vsyncpa [#allocation3], 0  ;;  %s599_s0 = inlined_call_operand.vmem [shape: f32[2,64], index: 0, kind: input, shape index: {}]   ;;  %s600_s1 = inlined_call_operand.hbm [shape: f32[64,768], index: 1, kind: input, shape index: {}]   ;;  %s601_s2 = inlined_call_operand.vmem [shape: f32[2,768], index: 2, kind: output, shape index: {}]  }
   0x1   :  { %9 = vsyncpa [#allocation3 + $0x1], 0  ;;  %s480_s9 = smov 0   ;;  %s482_s10 = smov 0  }
   0x2   :  { %s484_s11 = smov 0   ;;  %s486_s12 = smov 0  }
   0x3 LB: > { %s337_s13 = sadd.s32 4294967295, %s458_s12   ;;  %s500_s14 = sadd.s32 1, %s458_s12   ;;  %s458_s12 = sphi %s486_s12, %s609_s12   ;;  %s454_s11 = sphi %s484_s11, %s608_s11   ;;  %s450_s10 = sphi %s482_s10, %s607_s10   ;;  %s446_s9 = sphi %s480_s9, %s606_s9  }
   0x4   : > { %s40_s15 = ssub.s32 %s458_s12, %s500_s14  ;;  %s43_s16 = sadd.s32 1, %s454_s11 }
   0x5   : > { %p41_p0 = scmp.eq.s32.totalorder %s40_s15, 0  ;;  %p50_p1 = scmp.ne.s32.totalorder %s454_s11, %s450_s10 }
   0x6   : > { %p51_p2 = scmp.eq.s32.totalorder %s458_s12, 0  ;;  %p56_p3 = scmp.ne.s32.totalorder %s450_s10, %s446_s9 }
   0x7   : > { %s510_s17 = scalar_select %p41_p0, %s454_s11, %s43_s16  }
   0x8   : > { %p52_p4 = por %p51_p2, %p50_p1  ;;  %p57_p5 = scmp.eq.s32.totalorder %s337_s13, 0 }
   0x9   : > { %p359_p6 = scmp.lt.s32.totalorder %s458_s12, 3  ;;  %s109_s19 = sand.u32 1, %s454_s11  }
   0xa   : > { %p515_p7 = por %p57_p5, %p56_p3  ;;  %s341_s20 = sshll.u32 %s109_s19, 7 }
   0xb   : > { %s352_s21 = sshll.u32 %s458_s12, 8  ;;  %s113_s25 = scalar_lea.vmem [#allocation2], %s341_s20 }
   0xc   : > { %s603_s18 = scalar_select %p515_p7, 1, 0 }
   0xd   : > { %s524_s24 = scalar_lea.hbm %s600_s1, %s352_s21  ;;  %s120_s26 = sshll.u32 %s113_s25, 4  ;;  %s526_s26 = int_to_ptr.vmem [resolvable:$true] %s120_s26 }
   0xe   : > { %p528_p8 = pnand %p359_p6, %p52_p4  ;;  %s532_s28 = scalar_lea.sflag [#allocation3], %s109_s19 }
   0xf   : > { %s396_s29 = scalar_lea.hbm %s524_s24, 2048  ;;  %s401_s4 = scalar_lea.hbm %s600_s1, 6144 }
  0x10   : > { %p397_p9 = scmp.ne.s32.totalorder %s524_s24, %s396_s29  ;;  %p398_p10 = pneg %p528_p8 }
  0x11   : > { %p402_p13 = scmp.lt.s32.totalorder %s524_s24, %s600_s1  ;;  %p403_p0 = scmp.lt.s32.totalorder %s401_s4, %s396_s29 }
  0x12   : > { %p399_p11 = pnand %p398_p10, %p397_p9 }
  0x13   : > { %p404_p1 = por %p403_p0, %p402_p13 }
  0x14   : > { %p400_p12 = pneg %p399_p11 }
  0x16   : > { %p405_p2 = pnand %p404_p1, %p400_p12 }
  0x18   : > { %408 = shalt.err (!%p405_p2)
}
  0x19   : > { %s409_s7 = scalar_lea.vmem %s526_s26, 2048  ;;  %s460_s8 = smov [#allocation2]  }
  0x1a   : > { %p410_p3 = scmp.ne.s32.totalorder %s526_s26, %s409_s7  ;;  %s414_s9 = sshll.u32 %s460_s8, 4  ;;  %s415_s9 = int_to_ptr.vmem [resolvable:$false] %s414_s9 }
  0x1b   : > { %s416_s15 = scalar_lea.vmem %s415_s9, 4096  ;;  %p417_p6 = scmp.lt.s32.totalorder %s526_s26, %s415_s9 }
  0x1c   : > { %p412_p4 = pnand %p410_p3, %p398_p10  ;;  %p418_p9 = scmp.lt.s32.totalorder %s416_s15, %s409_s7 }
  0x1e   : > { %p413_p5 = pneg %p412_p4  ;;  %p419_p11 = por %p418_p9, %p417_p6 }
  0x20   : > { %p420_p7 = pnand %p419_p11, %p413_p5 }
  0x22   : > { %423 = shalt.err (!%p420_p7)
}
  0x23   : > { %s461_s16 = smov 768   ;;  %s462_s19 = smov 256  }
  0x24   : > { %s463_s20 = smov 16   ;;  %p344_p10 = scmp.ge.s32.totalorder %s458_s12, 1 }
  0x25   : > { %358 = dma.hbm_to_vmem [thread:$0]  (!%p528_p8), %s524_s24, 2048, %s526_s26, %s532_s28, %s461_s16, %s462_s19, %s463_s20  }
  0x26   : > { %p128_p12 = scmp.lt.s32.totalorder %s458_s12, 4 }
  0x28   : > { %p129_p13 = pnand %p344_p10, %p128_p12 }
  0x29   : > { %s134_s21 = sand.u32 (!%p129_p13), 1, %s450_s10   ;;  %p605_p7 = scmp.ne.s32.totalorder (!%p129_p13), %s603_s18, 0 }
  0x2a   : > { %132 = sbr.rel (%p129_p13) target bundleno = 263 (0x107), region = 28  ;;  %s345_s22 = sshll.u32 (!%p129_p13), %s134_s21, 7 }
  0x2b   : > { %s135_s23 = scalar_lea.sflag (!%p129_p13), [#allocation3], %s134_s21  ;;  %s556_s25 = scalar_lea.vmem (!%p129_p13), [#allocation2], %s345_s22 }
  0x2f   : > { %441 = dma.done.wait (%p605_p7), %s135_s23, 2048  }
  0x30   : > { %443 = vsyncadd (%p605_p7), %s135_s23, 4294965248  ;;  %v464_v0 = vmov 0.0   ;;  %v182_v1 = vld [vmem:[%s556_s25 + $0x78] sm:$0xff]  ;;  %v181_v2 = vld [vmem:[%s556_s25 + $0x70] sm:$0xff]  ;;  %vm183_vm0 = vcmask 523264   ;;  %s346_s26 = sshll.u32 %s337_s13, 1 }
  0x31   : > { %251 = vmatprep.mubr.f32.mxu0 %v464_v0  ;;  %v180_v3 = vld [vmem:[%s556_s25 + $0x68] sm:$0xff]  ;;  %203 = vmatprep.subr.mxu0 %v182_v1  ;;  %v179_v4 = vld [vmem:[%s556_s25 + $0x60] sm:$0xff]  ;;  %v178_v5 = vld [vmem:[%s556_s25 + $0x58] sm:$0xff]  ;;  %p161_p8 = scmp.lt.s32.totalorder %s346_s26, 5 }
  0x32   : > { %204 = vmatpush1.msra.mxu0 %v181_v2  ;;  %v177_v6 = vld [vmem:[%s556_s25 + $0x50] sm:$0xff]  ;;  %v176_v7 = vld [vmem:[%s556_s25 + $0x48] sm:$0xff]  ;;  %v175_v8 = vld [vmem:[%s556_s25 + $0x40] sm:$0xff] }
  0x33   : > { %205 = vmatprep.subr.mxu0 %v180_v3  ;;  %v174_v9 = vld [vmem:[%s556_s25 + $0x38] sm:$0xff]  ;;  %v173_v10 = vld [vmem:[%s556_s25 + $0x30] sm:$0xff]  ;;  %v172_v11 = vld [vmem:[%s556_s25 + $0x28] sm:$0xff]  ;;  %s611_s26 = smov (!%p161_p8, %s346_s26), 5 }
  0x34   : > { %206 = vmatpush1.msra.mxu0 %v179_v4  ;;  %v171_v12 = vld [vmem:[%s556_s25 + $0x20] sm:$0xff]  ;;  %v170_v13 = vld [vmem:[%s556_s25 + $0x18] sm:$0xff]  ;;  %v169_v14 = vld [vmem:[%s556_s25 + $0x10] sm:$0xff]  ;;  %s347_s27 = sshll.u32 %s611_s26, 1 }
  0x35   : > { %207 = vmatprep.subr.mxu0 %v178_v5  ;;  %v168_v15 = vld [vmem:[%s556_s25 + $0x8] sm:$0xff]  ;;  %v167_v16 = vld [vmem:[%s556_s25] sm:$0xff]  ;;  %s164_s30 = scalar_lea.vmem %s601_s2, %s347_s27 }
  0x36   : > { %208 = vmatpush1.msra.mxu0 %v177_v6  ;;  %v166_v17 = vld [vmem:[%s599_s0] sm:$0x3] }
  0x37   : > { %209 = vmatprep.subr.mxu0 %v176_v7 }
  0x38   : > { %210 = vmatpush1.msra.mxu0 %v175_v8 }
  0x39   : > { %211 = vmatprep.subr.mxu0 %v174_v9 }
  0x3a   : > { %212 = vmatpush1.msra.mxu0 %v173_v10 }
  0x3b   : > { %213 = vmatprep.subr.mxu0 %v172_v11 }
  0x3c   : > { %214 = vmatpush1.msra.mxu0 %v171_v12 }
  0x3d   : > { %215 = vmatprep.subr.mxu0 %v170_v13 }
  0x3e   : > { %216 = vmatpush1.msra.mxu0 %v169_v14 }
  0x3f   : > { %217 = vmatprep.subr.mxu0 %v168_v15 }
  0x40   : > { %218 = vmatpush1.msra.mxu0 %v167_v16 }
  0x41   : > { %348 = vmatmul.mubr.msk.f32.vlgmr.msra.gmra.mxu0 %vm183_vm0, %v166_v17 }
 0x101   : > { %v253_v18 = vpop.f32.mrf.mxu0 }
 0x103   : > { %v255_v19 = vpop.f32.mrf.mxu0 }
 0x104   : > { %v260_v20 = vcombine.low %v253_v18, %v255_v19 }
 0x106   : > { %349 = vst.sshfl [vmem:[%s164_s30] sm:$0x33 pattern:$0x76325410] %v260_v20 }
 0x107 PF: > { %p12_p0 = scmp.ge.s32.totalorder %s500_s14, 5   ;;  %s606_s9 = smov %s450_s10 }
 0x108   : > { %s607_s10 = smov %s454_s11  ;;  %s608_s11 = smov %s510_s17 }
 0x109   : > { %s609_s12 = smov %s500_s14  ;;  %14 = sbr.rel (!%p12_p0) target bundleno = 3 (0x3), region = 68 }
 0x10e   :  { %292 = vsyncpa [#allocation3], 1 }
 0x10f   :  { %294 = vsyncpa [#allocation3 + $0x1], 1 }

</bundles_post_ra>
